<compile_context>
chip_gen: v5e
topology: v5e:2x2
jax: 0.10.0
libtpu: 0.0.40
codegen_flags: <defaults>
</compile_context>

<pallas_src>
import functools
import random as pyrandom

import jax
import jax.numpy as jnp
from jax.experimental import pallas as pl
from jax.experimental.pallas import tpu as pltpu


# ----------------------------------------------------------------------------- #
# Kernel
# ----------------------------------------------------------------------------- #
def hash_ffn_kernel(tile_eid_ref, n_real_ref, x_ref, w1_ref, b1_ref, w2_ref,
                    b2_ref, o_ref):
    """Grid = (padded_token_tiles,).  Each tile holds tokens routed to a single
    expert (sorted/padded by expert outside the kernel); the expert's weights are
    selected by the BlockSpec index_maps via the scalar-prefetched per-tile expert
    id.  Tiles past the real padded-token count are skipped entirely."""
    del tile_eid_ref  # consumed by the index_maps only
    i = pl.program_id(0)

    @pl.when(i < n_real_ref[0])
    def _():
        x = x_ref[...]                                                   # (tile, dim) bf16
        h = jnp.dot(x, w1_ref[0], preferred_element_type=jnp.float32)    # (tile, dh)  f32
        h = jnp.maximum(h + b1_ref[0], 0.0)                              # bias + relu in f32
        # TODO(synk): relu_dropout with p>0 (training mode) not implemented; p=0 default.
        y = jnp.dot(h.astype(w2_ref.dtype), w2_ref[0],
                    preferred_element_type=jnp.float32)                  # (tile, dim) f32
        o_ref[...] = (y + b2_ref[0]).astype(o_ref.dtype)                 # single bf16 store


# ----------------------------------------------------------------------------- #
# Generation-aware tiling / VMEM plan
# ----------------------------------------------------------------------------- #
def _tpu_generation():
    try:
        kind = jax.devices()[0].device_kind.lower()
    except Exception:
        return 0
    if "v7" in kind or "7x" in kind:
        return 7
    if "v6" in kind:
        return 6
    if "v5" in kind:
        return 5
    return 0


def _vmem_plan(gen, tile, dim, dh, compute_dtype):
    """Per-generation VMEM limit + weight buffer count (2 = double-buffered)."""
    cap = {7: 48, 6: 96, 5: 96}.get(gen, 32) * 1024 * 1024
    wbytes = jnp.dtype(compute_dtype).itemsize
    weight_bytes = 2 * dim * dh * wbytes               # W1 + W2, one copy each
    act_bytes = 2 * tile * dim * wbytes                # x tile + out tile, one copy each
    scratch = tile * dh * 4 + tile * dim * 4           # f32 intermediates headroom
    need_double = 2 * weight_bytes + 2 * act_bytes + scratch + (2 << 20)
    weight_buffers = 2 if need_double <= cap else 1
    return cap, weight_buffers


# ----------------------------------------------------------------------------- #
# Wrapper
# ----------------------------------------------------------------------------- #
def hash_layer_ffn(x, orig_input, hash_bin_map, w1t, b1, w2t, b2, *,
                   tile=None, compute_dtype=jnp.bfloat16):
    """x: [B, T, dim] f32; orig_input: [B, T] int32 token ids.
    hash_bin_map: [dict_size] int32; w1t: [H, dim, dh]; b1: [H, dh];
    w2t: [H, dh, dim]; b2: [H, dim]."""
    gen = _tpu_generation()
    if tile is None:
        # MXU-native M: 256 on v6e/v7x (2x256x256 MXU), 128 on v5e/unknown.
        tile = 256 if gen >= 6 else 128
    dim = x.shape[-1]
    dh = w1t.shape[-1]
    vmem_limit_bytes, weight_buffers = _vmem_plan(gen, tile, dim, dh, compute_dtype)
    return _hash_layer_ffn_impl(
        x, orig_input, hash_bin_map, w1t, b1, w2t, b2,
        tile=tile, compute_dtype=compute_dtype,
        vmem_limit_bytes=vmem_limit_bytes, weight_buffers=weight_buffers)


@functools.partial(jax.jit, static_argnames=("tile", "compute_dtype",
                                             "vmem_limit_bytes", "weight_buffers"))
def _hash_layer_ffn_impl(x, orig_input, hash_bin_map, w1t, b1, w2t, b2, *,
                         tile, compute_dtype, vmem_limit_bytes, weight_buffers):
    B, T, dim = x.shape
    H, _, dh = w1t.shape
    N = B * T

    # ---- expert routing (plain XLA ops; sort tokens by expert id) -------------
    eids = jnp.take(hash_bin_map, orig_input.reshape(-1)).astype(jnp.int32)     # [N]
    order = jnp.argsort(eids).astype(jnp.int32)                                  # sorted-by-expert order
    sorted_eids = eids[order]

    counts = jnp.bincount(eids, length=H).astype(jnp.int32)                      # [H]
    padded_counts = ((counts + tile - 1) // tile) * tile                         # pad each group to tile
    padded_starts = jnp.concatenate(
        [jnp.zeros((1,), jnp.int32), jnp.cumsum(padded_counts)[:-1]]).astype(jnp.int32)
    padded_ends = padded_starts + padded_counts
    group_starts = jnp.concatenate(
        [jnp.zeros((1,), jnp.int32), jnp.cumsum(counts)[:-1]]).astype(jnp.int32)

    # static upper bound on the padded token count
    n_tiles = (N + tile - 1) // tile + H
    n_pad = n_tiles * tile

    # destination slot of every sorted token in the padded, expert-grouped layout
    pos_in_group = jnp.arange(N, dtype=jnp.int32) - group_starts[sorted_eids]
    dest = (padded_starts[sorted_eids] + pos_in_group).astype(jnp.int32)         # [N], unique

    # per-padded-slot source token (padding slots read token 0; never read back)
    src = jnp.zeros((n_pad,), jnp.int32).at[dest].set(order)

    # number of tiles that actually carry tokens (dynamic); tail tiles are skipped
    n_real = (jnp.sum(padded_counts) // tile).astype(jnp.int32)
    tile_idx = jnp.arange(n_tiles, dtype=jnp.int32)
    tile_starts = tile_idx * tile
    raw_eid = jnp.searchsorted(padded_ends, tile_starts, side="right").astype(jnp.int32)
    last_real_eid = raw_eid[jnp.maximum(n_real - 1, 0)]
    # tail tiles keep the last real tile's expert id -> weight block index does not
    # change across them -> no extra weight DMA for the skipped tiles.
    tile_eid = jnp.where(tile_idx < n_real,
                         jnp.minimum(raw_eid, H - 1), last_real_eid).astype(jnp.int32)
    n_real_arr = n_real.reshape(1)

    # ---- pack operands for the kernel (bf16 matmul inputs, f32 biases) --------
    x_sorted = jnp.take(x.reshape(N, dim).astype(compute_dtype), src, axis=0)    # [n_pad, dim]
    w1c = w1t.astype(compute_dtype)
    w2c = w2t.astype(compute_dtype)
    b1f = b1.astype(jnp.float32).reshape(H, 1, dh)       # (1, dh) blocks are full-extent
    b2f = b2.astype(jnp.float32).reshape(H, 1, dim)

    wbytes = jnp.dtype(compute_dtype).itemsize
    cost = pl.CostEstimate(
        flops=4 * n_pad * dim * dh,                       # two matmuls per token (upper bound)
        transcendentals=0,
        bytes_accessed=(2 * n_pad * dim * wbytes          # x in + bf16 out
                        + H * 2 * dim * dh * wbytes       # expert weights (once each)
                        + H * (dh + dim) * 4),            # biases
    )

    def w_spec(shape):
        if weight_buffers == 1:
            # Single-buffer the (large) expert weights: block index only changes at
            # expert boundaries, so exposing that DMA is nearly free and it halves
            # the weight VMEM footprint (important on v7x's 64 MiB VMEM).
            return pl.BlockSpec(shape, lambda i, te, nr: (te[i], 0, 0),
                                pipeline_mode=pl.Buffered(1))
        return pl.BlockSpec(shape, lambda i, te, nr: (te[i], 0, 0))

    out_sorted = pl.pallas_call(
        hash_ffn_kernel,
        out_shape=jax.ShapeDtypeStruct((n_pad, dim), compute_dtype),
        grid_spec=pltpu.PrefetchScalarGridSpec(
            num_scalar_prefetch=2,                         # per-tile expert ids + real tile count
            grid=(n_tiles,),
            in_specs=[
                pl.BlockSpec((tile, dim), lambda i, te, nr: (i, 0)),          # x tile
                w_spec((1, dim, dh)),                                          # W1[e] (transposed)
                pl.BlockSpec((1, 1, dh), lambda i, te, nr: (te[i], 0, 0)),     # b1[e]
                w_spec((1, dh, dim)),                                          # W2[e] (transposed)
                pl.BlockSpec((1, 1, dim), lambda i, te, nr: (te[i], 0, 0)),    # b2[e]
            ],
            out_specs=pl.BlockSpec((tile, dim), lambda i, te, nr: (i, 0)),
        ),
        compiler_params=pltpu.CompilerParams(
            dimension_semantics=("parallel",),
            vmem_limit_bytes=vmem_limit_bytes,
        ),
        cost_estimate=cost,
    )(tile_eid, n_real_arr, x_sorted, w1c, b1f, w2c, b2f)

    # ---- unsort back to the original token order (one int scatter + one gather)
    gather_idx = jnp.zeros((N,), jnp.int32).at[order].set(dest)                  # token -> padded slot
    out2 = jnp.take(out_sorted, gather_idx, axis=0).astype(x.dtype)              # [N, dim]
    return out2.reshape(B, T, dim)


# ----------------------------------------------------------------------------- #
# Parameter / hash-map construction and pure-JAX reference
# ----------------------------------------------------------------------------- #
def make_params(key, hashsize, dim, dim_hidden):
    """Deterministic xavier_uniform weights + small uniform biases, per expert."""
    kw1, kb1, kw2, kb2 = jax.random.split(key, 4)
    lim1 = (6.0 / (dim + dim_hidden)) ** 0.5
    lim2 = (6.0 / (dim_hidden + dim)) ** 0.5
    # PyTorch Linear stores weight as (out, in); we keep the transposed (in, out) form.
    w1t = jax.random.uniform(kw1, (hashsize, dim, dim_hidden),
                             minval=-lim1, maxval=lim1, dtype=jnp.float32)
    w2t = jax.random.uniform(kw2, (hashsize, dim_hidden, dim),
                             minval=-lim2, maxval=lim2, dtype=jnp.float32)
    b1 = jax.random.uniform(kb1, (hashsize, dim_hidden),
                            minval=-1.0 / dim ** 0.5, maxval=1.0 / dim ** 0.5,
                            dtype=jnp.float32)
    b2 = jax.random.uniform(kb2, (hashsize, dim),
                            minval=-1.0 / dim_hidden ** 0.5, maxval=1.0 / dim_hidden ** 0.5,
                            dtype=jnp.float32)
    return w1t, b1, w2t, b2


def make_hash_bin_map(dict_size, hashsize):
    """Same construction as HashLayerFFN.hash (python random, seed 42)."""
    pyrandom.seed(42)
    return jnp.asarray([pyrandom.randrange(0, hashsize) for _ in range(dict_size)],
                       dtype=jnp.int32)


def reference(x, orig_input, hash_bin_map, w1t, b1, w2t, b2,
              compute_dtype=jnp.bfloat16):
    """Pure-JAX reference with the same bf16-in / f32-accumulate numerics."""
    eids = jnp.take(hash_bin_map, orig_input)                        # [B, T]
    w1_tok = w1t[eids].astype(compute_dtype)                         # [B, T, dim, dh]
    w2_tok = w2t[eids].astype(compute_dtype)                         # [B, T, dh, dim]
    xc = x.astype(compute_dtype)
    h = jnp.einsum("btd,btdh->bth", xc, w1_tok,
                   preferred_element_type=jnp.float32) + b1[eids]
    h = jnp.maximum(h, 0.0)
    y = jnp.einsum("bth,bthd->btd", h.astype(compute_dtype), w2_tok,
                   preferred_element_type=jnp.float32) + b2[eids]
    return y.astype(x.dtype)


if __name__ == "__main__":
    B, T = 2, 64
    dim, dim_hidden = 128, 256          # lane-dense (multiples of 128)
    hashsize, dict_size = 4, 100

    key = jax.random.PRNGKey(0)
    kx, kid, kp = jax.random.split(key, 3)

    x = jax.random.normal(kx, (B, T, dim), dtype=jnp.float32)
    orig_input = jax.random.randint(kid, (B, T), 0, dict_size, dtype=jnp.int32)

    hash_bin_map = make_hash_bin_map(dict_size, hashsize)
    w1t, b1, w2t, b2 = make_params(kp, hashsize, dim, dim_hidden)

    out = hash_layer_ffn(x, orig_input, hash_bin_map, w1t, b1, w2t, b2)
    out = jax.block_until_ready(out)

    ref = reference(x, orig_input, hash_bin_map, w1t, b1, w2t, b2)
    assert out.shape == x.shape
    assert jnp.allclose(out, ref, atol=1e-2, rtol=1e-2), "mismatch vs reference"

    print("KERNEL_OK")
</pallas_src>

<mosaic_0001>
module attributes {stable_mosaic.version = 11 : i64} {
  func.func @hash_ffn_kernel(%arg0: i32, %arg1: memref<5xi32, #tpu.memory_space<smem>>, %arg2: memref<1xi32, #tpu.memory_space<smem>>, %arg3: memref<128x128xbf16, #tpu.memory_space<vmem>>, %arg4: memref<1x128x256xbf16, #tpu.memory_space<vmem>>, %arg5: memref<1x1x256xf32, #tpu.memory_space<vmem>>, %arg6: memref<1x256x128xbf16, #tpu.memory_space<vmem>>, %arg7: memref<1x1x128xf32, #tpu.memory_space<vmem>>, %arg8: memref<128x128xbf16, #tpu.memory_space<vmem>>) attributes {dimension_semantics = [#tpu.dimension_semantics<parallel>], iteration_bounds = array<i64: 5>, scalar_prefetch = 2 : i64, scratch_operands = 0 : i64, tpu.core_type = #tpu.core_type<tc>, window_params = [{transform_indices = @transform_0, window_bounds = array<i64: 128, 128>}, {transform_indices = @transform_1, window_bounds = array<i64: 1, 128, 256>}, {transform_indices = @transform_2, window_bounds = array<i64: 1, 1, 256>}, {transform_indices = @transform_3, window_bounds = array<i64: 1, 256, 128>}, {transform_indices = @transform_4, window_bounds = array<i64: 1, 1, 128>}, {transform_indices = @transform_5, window_bounds = array<i64: 128, 128>}]} {
    %c0 = arith.constant 0 : index
    %0 = memref.load %arg2[%c0] : memref<1xi32, #tpu.memory_space<smem>>
    %1 = arith.cmpi slt, %arg0, %0 : i32
    %2 = arith.extui %1 : i1 to i32
    %c0_i32 = arith.constant 0 : i32
    %3 = arith.cmpi ne, %2, %c0_i32 : i32
    scf.if %3 {
      %c0_0 = arith.constant 0 : index
      %c0_1 = arith.constant 0 : index
      %4 = vector.load %arg3[%c0_0, %c0_1] : memref<128x128xbf16, #tpu.memory_space<vmem>>, vector<128x128xbf16>
      %c0_2 = arith.constant 0 : index
      %c0_3 = arith.constant 0 : index
      %c0_4 = arith.constant 0 : index
      %5 = vector.load %arg4[%c0_2, %c0_3, %c0_4] : memref<1x128x256xbf16, #tpu.memory_space<vmem>>, vector<1x128x256xbf16>
      %6 = vector.shape_cast %5 : vector<1x128x256xbf16> to vector<128x256xbf16>
      %cst = arith.constant dense<0.000000e+00> : vector<128x256xf32>
      %7 = tpu.matmul %4, %6, %cst {dimension_numbers = #tpu.dot_dimension_numbers<[1], [0], [0], [1], [0, 0, 1, 1], [], []>} : vector<128x128xbf16>, vector<128x256xbf16>, vector<128x256xf32> -> vector<128x256xf32>
      %c0_5 = arith.constant 0 : index
      %c0_6 = arith.constant 0 : index
      %c0_7 = arith.constant 0 : index
      %8 = vector.load %arg5[%c0_5, %c0_6, %c0_7] : memref<1x1x256xf32, #tpu.memory_space<vmem>>, vector<1x1x256xf32>
      %9 = vector.shape_cast %8 : vector<1x1x256xf32> to vector<1x256xf32>
      %10 = vector.broadcast %9 : vector<1x256xf32> to vector<128x256xf32>
      %11 = arith.addf %7, %10 : vector<128x256xf32>
      %cst_8 = arith.constant 0.000000e+00 : f32
      %12 = vector.broadcast %cst_8 : f32 to vector<128x256xf32>
      %13 = arith.maximumf %11, %12 : vector<128x256xf32>
      %14 = arith.truncf %13 : vector<128x256xf32> to vector<128x256xbf16>
      %c0_9 = arith.constant 0 : index
      %c0_10 = arith.constant 0 : index
      %c0_11 = arith.constant 0 : index
      %15 = vector.load %arg6[%c0_9, %c0_10, %c0_11] : memref<1x256x128xbf16, #tpu.memory_space<vmem>>, vector<1x256x128xbf16>
      %16 = vector.shape_cast %15 : vector<1x256x128xbf16> to vector<256x128xbf16>
      %cst_12 = arith.constant dense<0.000000e+00> : vector<128x128xf32>
      %17 = tpu.matmul %14, %16, %cst_12 {dimension_numbers = #tpu.dot_dimension_numbers<[1], [0], [0], [1], [0, 0, 1, 1], [], []>} : vector<128x256xbf16>, vector<256x128xbf16>, vector<128x128xf32> -> vector<128x128xf32>
      %c0_13 = arith.constant 0 : index
      %c0_14 = arith.constant 0 : index
      %c0_15 = arith.constant 0 : index
      %18 = vector.load %arg7[%c0_13, %c0_14, %c0_15] : memref<1x1x128xf32, #tpu.memory_space<vmem>>, vector<1x1x128xf32>
      %19 = vector.shape_cast %18 : vector<1x1x128xf32> to vector<1x128xf32>
      %20 = vector.broadcast %19 : vector<1x128xf32> to vector<128x128xf32>
      %21 = arith.addf %17, %20 : vector<128x128xf32>
      %22 = arith.truncf %21 : vector<128x128xf32> to vector<128x128xbf16>
      %c0_16 = arith.constant 0 : index
      %c0_17 = arith.constant 0 : index
      %23 = vector.load %arg8[%c0_16, %c0_17] : memref<128x128xbf16, #tpu.memory_space<vmem>>, vector<128x128xbf16>
      tpu.vector_store %arg8[%c0_16, %c0_17], %22 {strides = array<i32>} : memref<128x128xbf16, #tpu.memory_space<vmem>>, vector<128x128xbf16>,
    } else {
    }
    return
  }
  func.func @transform_0(%arg0: i32, %arg1: memref<5xi32, #tpu.memory_space<smem>>, %arg2: memref<1xi32, #tpu.memory_space<smem>>) -> (i32, i32) {
    %c0_i32 = arith.constant 0 : i32
    %c0_i32_0 = arith.constant 0 : i32
    return %arg0, %c0_i32 : i32, i32
  }
  func.func @transform_1(%arg0: i32, %arg1: memref<5xi32, #tpu.memory_space<smem>>, %arg2: memref<1xi32, #tpu.memory_space<smem>>) -> (i32, i32, i32) {
    %0 = arith.index_cast %arg0 : i32 to index
    %1 = memref.load %arg1[%0] : memref<5xi32, #tpu.memory_space<smem>>
    %c0_i32 = arith.constant 0 : i32
    %c0_i32_0 = arith.constant 0 : i32
    %c0_i32_1 = arith.constant 0 : i32
    return %1, %c0_i32, %c0_i32_0 : i32, i32, i32
  }
  func.func @transform_2(%arg0: i32, %arg1: memref<5xi32, #tpu.memory_space<smem>>, %arg2: memref<1xi32, #tpu.memory_space<smem>>) -> (i32, i32, i32) {
    %0 = arith.index_cast %arg0 : i32 to index
    %1 = memref.load %arg1[%0] : memref<5xi32, #tpu.memory_space<smem>>
    %c0_i32 = arith.constant 0 : i32
    %c0_i32_0 = arith.constant 0 : i32
    %c0_i32_1 = arith.constant 0 : i32
    return %1, %c0_i32, %c0_i32_0 : i32, i32, i32
  }
  func.func @transform_3(%arg0: i32, %arg1: memref<5xi32, #tpu.memory_space<smem>>, %arg2: memref<1xi32, #tpu.memory_space<smem>>) -> (i32, i32, i32) {
    %0 = arith.index_cast %arg0 : i32 to index
    %1 = memref.load %arg1[%0] : memref<5xi32, #tpu.memory_space<smem>>
    %c0_i32 = arith.constant 0 : i32
    %c0_i32_0 = arith.constant 0 : i32
    %c0_i32_1 = arith.constant 0 : i32
    return %1, %c0_i32, %c0_i32_0 : i32, i32, i32
  }
  func.func @transform_4(%arg0: i32, %arg1: memref<5xi32, #tpu.memory_space<smem>>, %arg2: memref<1xi32, #tpu.memory_space<smem>>) -> (i32, i32, i32) {
    %0 = arith.index_cast %arg0 : i32 to index
    %1 = memref.load %arg1[%0] : memref<5xi32, #tpu.memory_space<smem>>
    %c0_i32 = arith.constant 0 : i32
    %c0_i32_0 = arith.constant 0 : i32
    %c0_i32_1 = arith.constant 0 : i32
    return %1, %c0_i32, %c0_i32_0 : i32, i32, i32
  }
  func.func @transform_5(%arg0: i32, %arg1: memref<5xi32, #tpu.memory_space<smem>>, %arg2: memref<1xi32, #tpu.memory_space<smem>>) -> (i32, i32) {
    %c0_i32 = arith.constant 0 : i32
    %c0_i32_0 = arith.constant 0 : i32
    return %arg0, %c0_i32 : i32, i32
  }
}

</mosaic_0001>

<bundles_post_ra>
// kernel: custom-call
= control target key start
LH: loop header
LB: loop body
LE: loop exit
PB: predicated region body
PF: predicated region fallthrough
CT: control target
= control target key end

     0   :  { %s6_s0 = inlined_call_operand.vmem [shape: u32[5], index: 0, kind: output, shape index: {}]  }

// kernel: _hash_layer_ffn_impl.1
= control target key start
LH: loop header
LB: loop body
LE: loop exit
PB: predicated region body
PF: predicated region fallthrough
CT: control target
= control target key end

     0   :  { %s1316_s29 = smov [#allocation3]   ;;  %s1537_s0 = inlined_call_operand.vmem [shape: s32[5], index: 0, kind: input, shape index: {}]   ;;  %s1538_s1 = inlined_call_operand.<no memory space> [shape: s32[1], index: 1, kind: input, shape index: {}]   ;;  %s1539_s2 = inlined_call_operand.vmem [shape: bf16[640,128], index: 2, kind: input, shape index: {}]   ;;  %s1540_s3 = inlined_call_operand.vmem [shape: bf16[4,128,256], index: 3, kind: input, shape index: {}]   ;;  %s1541_s4 = inlined_call_operand.vmem [shape: f32[4,1,256], index: 4, kind: input, shape index: {}]   ;;  %s1542_s5 = inlined_call_operand.vmem [shape: bf16[4,256,128], index: 5, kind: input, shape index: {}]   ;;  %s1543_s6 = inlined_call_operand.vmem [shape: f32[4,1,128], index: 6, kind: input, shape index: {}]   ;;  %s1544_s7 = inlined_call_operand.vmem [shape: bf16[640,128], index: 7, kind: output, shape index: {}]  }
   0x1   :  { %s13_s26 = sshll.u32 %s1537_s0, 4  ;;  %17 = sst [smem:[#allocation4]] %s1538_s1  ;;  %s14_s26 = int_to_ptr.vmem [resolvable:$true] %s13_s26 }
   0x2   :  { %16 = dma.vmem_to_smem %s14_s26, 16, %s1316_s29, [#allocation2] }
   0x3   :  { %1310 = dma.done.wait [#allocation2], 16 }
   0x4   :  { %1311 = vsyncadd [#allocation2], 4294967280 }
   0x5   :  { %20 = sfence }
   0x6   :  { %s1363_s30 = smov 0  }
   0x7 LB: > { %s1369_s0 = sadd.s32 4294967295, %s1314_s30   ;;  %p1022_p0 = scmp.ge.s32.totalorder %s1314_s30, 1  ;;  %s1314_s30 = sphi %s1363_s30, %s26_s30  }
   0x8   : > { %p252_p1 = scmp.lt.s32.totalorder %s1314_s30, 6 }
   0xa   : > { %p253_p2 = pnand %p1022_p0, %p252_p1 }
   0xb   : > { %s1023_s1 = sshll.u32 (!%p253_p2), %s1369_s0, 4  ;;  %s307_s8 = sld [smem:[#allocation3 + %s1369_s0]] (!%p253_p2) }
   0xc   : > { %256 = sbr.rel (%p253_p2) target bundleno = 467 (0x1d3), region = 40  ;;  %p302_p3 = scmp.lt.s32.totalorder (!%p253_p2), %s1023_s1, 79 }
   0xd   : > { %s314_s9 = sld [smem:[#allocation3 + %s1369_s0]] (!%p253_p2) }
   0xe   : > { %s320_s10 = sld [smem:[#allocation3 + %s1369_s0]] (!%p253_p2) }
   0xf   : > { %s327_s11 = sld [smem:[#allocation3 + %s1369_s0]] (!%p253_p2) }
  0x10   : > { %s338_s13 = sld [smem:[#allocation4]] (!%p253_p2) }
  0x11   : > { %s1546_s1 = smov (!%p302_p3, %s1023_s1), 79  ;;  %p308_p4 = scmp.lt.s32.totalorder %s307_s8, 3 }
  0x12   : > { %s1024_s12 = sshll.u32 %s1546_s1, 2 }
  0x13   : > { %s1381_s16 = scalar_lea.vmem %s1539_s2, %s1024_s12  ;;  %p315_p5 = scmp.lt.s32.totalorder %s314_s9, 3 }
  0x14   : > { %s1386_s19 = scalar_lea.vmem %s1544_s7, %s1024_s12  ;;  %s1548_s8 = smov (!%p308_p4, %s307_s8), 3 }
  0x15   : > { %s1550_s9 = smov (!%p315_p5, %s314_s9), 3  ;;  %s1195_s20 = sshll.u32 %s1548_s8, 7 }
  0x16   : > { %p321_p6 = scmp.lt.s32.totalorder %s320_s10, 3  ;;  %s1391_s23 = scalar_lea.vmem %s1540_s3, %s1195_s20 }
  0x17   : > { %s1027_s24 = sshll.u32 %s1550_s9, 1  ;;  %p328_p7 = scmp.lt.s32.totalorder %s327_s11, 3 }
  0x18   : > { %s1396_s27 = scalar_lea.vmem %s1541_s4, %s1027_s24  ;;  %s1552_s10 = smov (!%p321_p6, %s320_s10), 3 }
  0x19   : > { %s1554_s11 = smov (!%p328_p7, %s327_s11), 3  ;;  %s1196_s28 = sshll.u32 %s1552_s10, 7 }
  0x1a   : > { %s1403_s8 = scalar_lea.vmem %s1542_s5, %s1196_s28  ;;  %s330_s9 = scalar_lea.vmem %s1543_s6, %s1554_s11 }
  0x1b   : > { %p1032_p8 = scmp.ge.s32.totalorder %s1369_s0, %s338_s13 }
  0x1d   : > { %342 = sbr.rel (%p1032_p8) target bundleno = 467 (0x1d3), region = 44 }
  0x22   : > { %v1123_v0 = vld [vmem:[%s1391_s23 + $0x70] sm:$0xf]  ;;  %v1220_v1 = vld [vmem:[%s1391_s23 + $0x74] sm:$0xf0]  ;;  %v1219_v2 = vld [vmem:[%s1391_s23 + $0x74] sm:$0xf] }
  0x23   : > { %v1124_v3 = vor.u32 %v1220_v1, %v1123_v0  ;;  %v1125_v4 = vld [vmem:[%s1391_s23 + $0x78] sm:$0xf0]  ;;  %v1115_v5 = vld [vmem:[%s1391_s23 + $0x60] sm:$0xf]  ;;  %v1218_v6 = vld [vmem:[%s1391_s23 + $0x64] sm:$0xf0] }
  0x24   : > { %v1128_v7 = vor.u32 %v1219_v2, %v1125_v4  ;;  %v1217_v8 = vld [vmem:[%s1391_s23 + $0x64] sm:$0xf]  ;;  %v1117_v9 = vld [vmem:[%s1391_s23 + $0x68] sm:$0xf0]  ;;  %v1116_v10 = vor.u32 %v1218_v6, %v1115_v5  ;;  %v1107_v12 = vld [vmem:[%s1391_s23 + $0x50] sm:$0xf] }
  0x25   : > { %509 = vmatpush.bf16.msra.mxu0 %v1124_v3  ;;  %v1120_v11 = vor.u32 %v1217_v8, %v1117_v9  ;;  %v1216_v13 = vld [vmem:[%s1391_s23 + $0x54] sm:$0xf0]  ;;  %v1215_v14 = vld [vmem:[%s1391_s23 + $0x54] sm:$0xf]  ;;  %v1109_v15 = vld [vmem:[%s1391_s23 + $0x58] sm:$0xf0] }
  0x26   : > { %558 = vmatpush.bf16.msra.mxu1 %v1128_v7  ;;  %v1108_v16 = vor.u32 %v1216_v13, %v1107_v12  ;;  %v1112_v17 = vor.u32 %v1215_v14, %v1109_v15  ;;  %v1099_v18 = vld [vmem:[%s1391_s23 + $0x40] sm:$0xf]  ;;  %v1214_v19 = vld [vmem:[%s1391_s23 + $0x44] sm:$0xf0]  ;;  %v1213_v20 = vld [vmem:[%s1391_s23 + $0x44] sm:$0xf] }
  0x27   : > { %v1101_v21 = vld [vmem:[%s1391_s23 + $0x48] sm:$0xf0]  ;;  %v1100_v22 = vor.u32 %v1214_v19, %v1099_v18  ;;  %v1091_v24 = vld [vmem:[%s1391_s23 + $0x30] sm:$0xf]  ;;  %v1212_v25 = vld [vmem:[%s1391_s23 + $0x34] sm:$0xf0] }
  0x28   : > { %v1104_v23 = vor.u32 %v1213_v20, %v1101_v21  ;;  %v1211_v26 = vld [vmem:[%s1391_s23 + $0x34] sm:$0xf]  ;;  %v1093_v27 = vld [vmem:[%s1391_s23 + $0x38] sm:$0xf0]  ;;  %v1092_v28 = vor.u32 %v1212_v25, %v1091_v24  ;;  %v1083_v30 = vld [vmem:[%s1391_s23 + $0x20] sm:$0xf] }
  0x29   : > { %510 = vmatpush.bf16.msra.mxu0 %v1116_v10  ;;  %v1096_v29 = vor.u32 %v1211_v26, %v1093_v27  ;;  %v1210_v31 = vld [vmem:[%s1391_s23 + $0x24] sm:$0xf0]  ;;  %v1209_v32 = vld [vmem:[%s1391_s23 + $0x24] sm:$0xf]  ;;  %v1085_v33 = vld [vmem:[%s1391_s23 + $0x28] sm:$0xf0] }
  0x2a   : > { %559 = vmatpush.bf16.msra.mxu1 %v1120_v11  ;;  %v1084_v34 = vor.u32 %v1210_v31, %v1083_v30  ;;  %v1088_v35 = vor.u32 %v1209_v32, %v1085_v33  ;;  %v1075_v36 = vld [vmem:[%s1391_s23 + $0x10] sm:$0xf]  ;;  %v1208_v37 = vld [vmem:[%s1391_s23 + $0x14] sm:$0xf0]  ;;  %v1207_v38 = vld [vmem:[%s1391_s23 + $0x14] sm:$0xf] }
  0x2b   : > { %v1077_v39 = vld [vmem:[%s1391_s23 + $0x18] sm:$0xf0]  ;;  %v1076_v40 = vor.u32 %v1208_v37, %v1075_v36  ;;  %v1067_v42 = vld [vmem:[%s1391_s23] sm:$0xf]  ;;  %v1206_v43 = vld [vmem:[%s1391_s23 + $0x4] sm:$0xf0] }
  0x2c   : > { %v1080_v41 = vor.u32 %v1207_v38, %v1077_v39  ;;  %v1205_v44 = vld [vmem:[%s1391_s23 + $0x4] sm:$0xf]  ;;  %v1069_v45 = vld [vmem:[%s1391_s23 + $0x8] sm:$0xf0]  ;;  %v1068_v46 = vor.u32 %v1206_v43, %v1067_v42  ;;  %v1199_v50 = vld [vmem:[%s1381_s16 + $0x10] sm:$0xff] }
  0x2d   : > { %511 = vmatpush.bf16.msra.mxu0 %v1108_v16  ;;  %v1072_v47 = vor.u32 %v1205_v44, %v1069_v45  ;;  %v1197_v48 = vld [vmem:[%s1381_s16] sm:$0xff]  ;;  %v1198_v49 = vld [vmem:[%s1381_s16 + $0x8] sm:$0xff]  ;;  %v1200_v51 = vld [vmem:[%s1381_s16 + $0x18] sm:$0xff] }
  0x2e   : > { %560 = vmatpush.bf16.msra.mxu1 %v1112_v17  ;;  %v1201_v52 = vld [vmem:[%s1381_s16 + $0x20] sm:$0xff]  ;;  %v1228_v53 = vld [vmem:[%s1403_s8 + $0x38] sm:$0xff]  ;;  %v1202_v55 = vld [vmem:[%s1381_s16 + $0x28] sm:$0xff] }
  0x2f   : > { %v1236_v54 = vld [vmem:[%s1403_s8 + $0x78] sm:$0xff]  ;;  %787 = vmatpush.bf16.msra.mxu2 %v1228_v53  ;;  %v1227_v56 = vld [vmem:[%s1403_s8 + $0x30] sm:$0xff]  ;;  %v1226_v58 = vld [vmem:[%s1403_s8 + $0x28] sm:$0xff] }
  0x30   : > { %836 = vmatpush.bf16.msra.mxu3 %v1236_v54  ;;  %v1235_v57 = vld [vmem:[%s1403_s8 + $0x70] sm:$0xff]  ;;  %v1234_v59 = vld [vmem:[%s1403_s8 + $0x68] sm:$0xff]  ;;  %v1225_v60 = vld [vmem:[%s1403_s8 + $0x20] sm:$0xff] }
  0x31   : > { %512 = vmatpush.bf16.msra.mxu0 %v1100_v22  ;;  %v1233_v61 = vld [vmem:[%s1403_s8 + $0x60] sm:$0xff]  ;;  %v1203_v62 = vld [vmem:[%s1381_s16 + $0x30] sm:$0xff]  ;;  %v1224_v63 = vld [vmem:[%s1403_s8 + $0x18] sm:$0xff] }
  0x32   : > { %561 = vmatpush.bf16.msra.mxu1 %v1104_v23  ;;  %v1232_v0 = vld [vmem:[%s1403_s8 + $0x58] sm:$0xff]  ;;  %v1223_v1 = vld [vmem:[%s1403_s8 + $0x10] sm:$0xff]  ;;  %v1222_v3 = vld [vmem:[%s1403_s8 + $0x8] sm:$0xff] }
  0x33   : > { %788 = vmatpush.bf16.msra.mxu2 %v1227_v56  ;;  %v1231_v2 = vld [vmem:[%s1403_s8 + $0x50] sm:$0xff]  ;;  %v1230_v4 = vld [vmem:[%s1403_s8 + $0x48] sm:$0xff]  ;;  %v1221_v5 = vld [vmem:[%s1403_s8] sm:$0xff] }
  0x34   : > { %837 = vmatpush.bf16.msra.mxu3 %v1235_v57  ;;  %v1229_v6 = vld [vmem:[%s1403_s8 + $0x40] sm:$0xff]  ;;  %v1204_v7 = vld [vmem:[%s1381_s16 + $0x38] sm:$0xff] }
  0x35   : > { %513 = vmatpush.bf16.msra.mxu0 %v1092_v28  ;;  %v375_v8 = vld [vmem:[%s1396_s27] sm:$0x3] }
  0x36   : > { %562 = vmatpush.bf16.msra.mxu1 %v1096_v29  ;;  %v1467_v11 = vperm.slane %v375_v8, 0  ;;  %v1469_v12 = vperm.slane %v375_v8, 1 }
  0x37   : > { %789 = vmatpush.bf16.msra.mxu2 %v1226_v58 }
  0x38   : > { %838 = vmatpush.bf16.msra.mxu3 %v1234_v59 }
  0x39   : > { %514 = vmatpush.bf16.msra.mxu0 %v1084_v34 }
  0x3a   : > { %563 = vmatpush.bf16.msra.mxu1 %v1088_v35 }
  0x3b   : > { %790 = vmatpush.bf16.msra.mxu2 %v1225_v60 }
  0x3c   : > { %839 = vmatpush.bf16.msra.mxu3 %v1233_v61 }
  0x3d   : > { %515 = vmatpush.bf16.msra.mxu0 %v1076_v40 }
  0x3e   : > { %564 = vmatpush.bf16.msra.mxu1 %v1080_v41 }
  0x3f   : > { %791 = vmatpush.bf16.msra.mxu2 %v1224_v63 }
  0x40   : > { %840 = vmatpush.bf16.msra.mxu3 %v1232_v0 }
  0x41   : > { %516 = vmatpush.bf16.msra.mxu0 %v1068_v46 }
  0x42   : > { %565 = vmatpush.bf16.msra.mxu1 %v1072_v47 }
  0x43   : > { %792 = vmatpush.bf16.msra.mxu2 %v1223_v1 }
  0x44   : > { %517 = vmatmul.bf16.vlgmr.msra.gmra.mxu0 %v1197_v48  ;;  %841 = vmatpush.bf16.msra.mxu3 %v1231_v2 }
  0x45   : > { %566 = vmatmul.bf16.vlgmr.msra.gmra.mxu1 %v1197_v48 }
  0x47   : > { %793 = vmatpush.bf16.msra.mxu2 %v1222_v3 }
  0x48   : > { %842 = vmatpush.bf16.msra.mxu3 %v1230_v4 }
  0x4b   : > { %794 = vmatpush.bf16.msra.mxu2 %v1221_v5 }
  0x4c   : > { %843 = vmatpush.bf16.msra.mxu3 %v1229_v6 }
  0x54   : > { %522 = vmatmul.bf16.gmra.mxu0 %v1198_v49 }
  0x55   : > { %571 = vmatmul.bf16.gmra.mxu1 %v1198_v49 }
  0x64   : > { %527 = vmatmul.bf16.gmra.mxu0 %v1199_v50 }
  0x65   : > { %576 = vmatmul.bf16.gmra.mxu1 %v1199_v50 }
  0x74   : > { %532 = vmatmul.bf16.gmra.mxu0 %v1200_v51 }
  0x75   : > { %581 = vmatmul.bf16.gmra.mxu1 %v1200_v51 }
  0x84   : > { %537 = vmatmul.bf16.gmra.mxu0 %v1201_v52 }
  0x85   : > { %586 = vmatmul.bf16.gmra.mxu1 %v1201_v52 }
  0x94   : > { %542 = vmatmul.bf16.gmra.mxu0 %v1202_v55 }
  0x95   : > { %591 = vmatmul.bf16.gmra.mxu1 %v1202_v55 }
  0xa4   : > { %547 = vmatmul.bf16.gmra.mxu0 %v1203_v62 }
  0xa5   : > { %596 = vmatmul.bf16.gmra.mxu1 %v1203_v62 }
  0xb4   : > { %552 = vmatmul.bf16.gmra.mxu0 %v1204_v7 }
  0xb5   : > { %601 = vmatmul.bf16.gmra.mxu1 %v1204_v7 }
  0xc1   : > { %v518_v9 = vpop.f32.mrf.mxu0 }
  0xc2   : > { %v567_v10 = vpop.f32.mrf.mxu1  ;;  %v519_v13 = vadd.f32 %v518_v9, %v1467_v11 }
  0xc3   : > { %v568_v14 = vadd.f32 %v567_v10, %v1469_v12 }
  0xc4   : > { %v607_v19 = vmax.f32 %v519_v13, 0.0 }
  0xc5   : > { %v608_v21 = vmax.f32 %v568_v14, 0.0 }
  0xc9   : > { %v520_v15 = vpop.f32.mrf.mxu0 }
  0xca   : > { %v521_v16 = vadd.f32 %v520_v15, %v1467_v11  ;;  %v569_v17 = vpop.f32.mrf.mxu1 }
  0xcb   : > { %v570_v18 = vadd.f32 %v569_v17, %v1469_v12 }
  0xcc   : > { %v609_v20 = vmax.f32 %v521_v16, 0.0 }
  0xcd   : > { %v610_v22 = vmax.f32 %v570_v18, 0.0 }
  0xce   : > { %v639_v23 = vpack.c.bf16 %v609_v20, %v607_v19 }
  0xcf   : > { %v640_v24 = vpack.c.bf16 %v610_v22, %v608_v21 }
  0xd0   : > { %795 = vmatmul.bf16.vlgmr.msra.gmra.mxu2 %v639_v23 }
  0xd1   : > { %844 = vmatmul.bf16.vlgmr.msra.gmra.mxu3 %v640_v24  ;;  %v523_v25 = vpop.f32.mrf.mxu0 }
  0xd2   : > { %v572_v26 = vpop.f32.mrf.mxu1  ;;  %v524_v27 = vadd.f32 %v523_v25, %v1467_v11 }
  0xd3   : > { %v573_v28 = vadd.f32 %v572_v26, %v1469_v12 }
  0xd4   : > { %v611_v33 = vmax.f32 %v524_v27, 0.0 }
  0xd5   : > { %v612_v35 = vmax.f32 %v573_v28, 0.0 }
  0xd9   : > { %v525_v29 = vpop.f32.mrf.mxu0 }
  0xda   : > { %v526_v30 = vadd.f32 %v525_v29, %v1467_v11  ;;  %v574_v31 = vpop.f32.mrf.mxu1 }
  0xdb   : > { %v575_v32 = vadd.f32 %v574_v31, %v1469_v12 }
  0xdc   : > { %v613_v34 = vmax.f32 %v526_v30, 0.0 }
  0xdd   : > { %v614_v36 = vmax.f32 %v575_v32, 0.0 }
  0xde   : > { %v641_v37 = vpack.c.bf16 %v613_v34, %v611_v33 }
  0xdf   : > { %v642_v38 = vpack.c.bf16 %v614_v36, %v612_v35 }
  0xe0   : > { %800 = vmatmul.bf16.gmra.mxu2 %v641_v37 }
  0xe1   : > { %849 = vmatmul.bf16.gmra.mxu3 %v642_v38  ;;  %v528_v39 = vpop.f32.mrf.mxu0 }
  0xe2   : > { %v577_v40 = vpop.f32.mrf.mxu1  ;;  %v529_v41 = vadd.f32 %v528_v39, %v1467_v11 }
  0xe3   : > { %v578_v42 = vadd.f32 %v577_v40, %v1469_v12 }
  0xe4   : > { %v615_v47 = vmax.f32 %v529_v41, 0.0 }
  0xe5   : > { %v616_v49 = vmax.f32 %v578_v42, 0.0 }
  0xe9   : > { %v530_v43 = vpop.f32.mrf.mxu0 }
  0xea   : > { %v531_v44 = vadd.f32 %v530_v43, %v1467_v11  ;;  %v579_v45 = vpop.f32.mrf.mxu1 }
  0xeb   : > { %v580_v46 = vadd.f32 %v579_v45, %v1469_v12 }
  0xec   : > { %v617_v48 = vmax.f32 %v531_v44, 0.0 }
  0xed   : > { %v618_v50 = vmax.f32 %v580_v46, 0.0 }
  0xee   : > { %v643_v51 = vpack.c.bf16 %v617_v48, %v615_v47 }
  0xef   : > { %v644_v52 = vpack.c.bf16 %v618_v50, %v616_v49 }
  0xf0   : > { %805 = vmatmul.bf16.gmra.mxu2 %v643_v51 }
  0xf1   : > { %854 = vmatmul.bf16.gmra.mxu3 %v644_v52  ;;  %v533_v53 = vpop.f32.mrf.mxu0 }
  0xf2   : > { %v582_v54 = vpop.f32.mrf.mxu1  ;;  %v534_v55 = vadd.f32 %v533_v53, %v1467_v11 }
  0xf3   : > { %v583_v56 = vadd.f32 %v582_v54, %v1469_v12 }
  0xf4   : > { %v619_v61 = vmax.f32 %v534_v55, 0.0 }
  0xf5   : > { %v620_v63 = vmax.f32 %v583_v56, 0.0 }
  0xf9   : > { %v535_v57 = vpop.f32.mrf.mxu0 }
  0xfa   : > { %v536_v58 = vadd.f32 %v535_v57, %v1467_v11  ;;  %v584_v59 = vpop.f32.mrf.mxu1 }
  0xfb   : > { %v585_v60 = vadd.f32 %v584_v59, %v1469_v12 }
  0xfc   : > { %v621_v62 = vmax.f32 %v536_v58, 0.0 }
  0xfd   : > { %v622_v0 = vmax.f32 %v585_v60, 0.0 }
  0xfe   : > { %v645_v1 = vpack.c.bf16 %v621_v62, %v619_v61 }
  0xff   : > { %v646_v2 = vpack.c.bf16 %v622_v0, %v620_v63  ;;  %v1508_v63 = vld [vmem:[%s330_s9] ss:$0 sm:$0xff] }
 0x100   : > { %810 = vmatmul.bf16.gmra.mxu2 %v645_v1 }
 0x101   : > { %859 = vmatmul.bf16.gmra.mxu3 %v646_v2  ;;  %v538_v3 = vpop.f32.mrf.mxu0 }
 0x102   : > { %v587_v4 = vpop.f32.mrf.mxu1  ;;  %v539_v5 = vadd.f32 %v538_v3, %v1467_v11 }
 0x103   : > { %v588_v6 = vadd.f32 %v587_v4, %v1469_v12 }
 0x104   : > { %v623_v13 = vmax.f32 %v539_v5, 0.0 }
 0x105   : > { %v624_v15 = vmax.f32 %v588_v6, 0.0 }
 0x109   : > { %v540_v7 = vpop.f32.mrf.mxu0 }
 0x10a   : > { %v541_v8 = vadd.f32 %v540_v7, %v1467_v11  ;;  %v589_v9 = vpop.f32.mrf.mxu1 }
 0x10b   : > { %v590_v10 = vadd.f32 %v589_v9, %v1469_v12 }
 0x10c   : > { %v625_v14 = vmax.f32 %v541_v8, 0.0 }
 0x10d   : > { %v626_v16 = vmax.f32 %v590_v10, 0.0 }
 0x10e   : > { %v647_v17 = vpack.c.bf16 %v625_v14, %v623_v13 }
 0x10f   : > { %v648_v18 = vpack.c.bf16 %v626_v16, %v624_v15 }
 0x110   : > { %815 = vmatmul.bf16.gmra.mxu2 %v647_v17 }
 0x111   : > { %864 = vmatmul.bf16.gmra.mxu3 %v648_v18  ;;  %v543_v19 = vpop.f32.mrf.mxu0 }
 0x112   : > { %v592_v20 = vpop.f32.mrf.mxu1  ;;  %v544_v21 = vadd.f32 %v543_v19, %v1467_v11 }
 0x113   : > { %v593_v22 = vadd.f32 %v592_v20, %v1469_v12 }
 0x114   : > { %v627_v27 = vmax.f32 %v544_v21, 0.0 }
 0x115   : > { %v628_v29 = vmax.f32 %v593_v22, 0.0 }
 0x119   : > { %v545_v23 = vpop.f32.mrf.mxu0 }
 0x11a   : > { %v546_v24 = vadd.f32 %v545_v23, %v1467_v11  ;;  %v594_v25 = vpop.f32.mrf.mxu1 }
 0x11b   : > { %v595_v26 = vadd.f32 %v594_v25, %v1469_v12 }
 0x11c   : > { %v629_v28 = vmax.f32 %v546_v24, 0.0 }
 0x11d   : > { %v630_v30 = vmax.f32 %v595_v26, 0.0 }
 0x11e   : > { %v649_v31 = vpack.c.bf16 %v629_v28, %v627_v27 }
 0x11f   : > { %v650_v32 = vpack.c.bf16 %v630_v30, %v628_v29 }
 0x120   : > { %820 = vmatmul.bf16.gmra.mxu2 %v649_v31 }
 0x121   : > { %869 = vmatmul.bf16.gmra.mxu3 %v650_v32  ;;  %v548_v33 = vpop.f32.mrf.mxu0 }
 0x122   : > { %v597_v34 = vpop.f32.mrf.mxu1  ;;  %v549_v35 = vadd.f32 %v548_v33, %v1467_v11 }
 0x123   : > { %v598_v36 = vadd.f32 %v597_v34, %v1469_v12 }
 0x124   : > { %v631_v41 = vmax.f32 %v549_v35, 0.0 }
 0x125   : > { %v632_v43 = vmax.f32 %v598_v36, 0.0 }
 0x129   : > { %v550_v37 = vpop.f32.mrf.mxu0 }
 0x12a   : > { %v551_v38 = vadd.f32 %v550_v37, %v1467_v11  ;;  %v599_v39 = vpop.f32.mrf.mxu1 }
 0x12b   : > { %v600_v40 = vadd.f32 %v599_v39, %v1469_v12 }
 0x12c   : > { %v633_v42 = vmax.f32 %v551_v38, 0.0 }
 0x12d   : > { %v634_v44 = vmax.f32 %v600_v40, 0.0 }
 0x12e   : > { %v651_v45 = vpack.c.bf16 %v633_v42, %v631_v41 }
 0x12f   : > { %v652_v46 = vpack.c.bf16 %v634_v44, %v632_v43 }
 0x130   : > { %825 = vmatmul.bf16.gmra.mxu2 %v651_v45 }
 0x131   : > { %874 = vmatmul.bf16.gmra.mxu3 %v652_v46  ;;  %v553_v47 = vpop.f32.mrf.mxu0 }
 0x132   : > { %v602_v48 = vpop.f32.mrf.mxu1  ;;  %v554_v49 = vadd.f32 %v553_v47, %v1467_v11 }
 0x133   : > { %v603_v50 = vadd.f32 %v602_v48, %v1469_v12 }
 0x134   : > { %v635_v55 = vmax.f32 %v554_v49, 0.0 }
 0x135   : > { %v636_v57 = vmax.f32 %v603_v50, 0.0 }
 0x139   : > { %v555_v51 = vpop.f32.mrf.mxu0 }
 0x13a   : > { %v556_v52 = vadd.f32 %v555_v51, %v1467_v11  ;;  %v604_v53 = vpop.f32.mrf.mxu1 }
 0x13b   : > { %v605_v54 = vadd.f32 %v604_v53, %v1469_v12 }
 0x13c   : > { %v637_v56 = vmax.f32 %v556_v52, 0.0 }
 0x13d   : > { %v638_v58 = vmax.f32 %v605_v54, 0.0 }
 0x13e   : > { %v653_v59 = vpack.c.bf16 %v637_v56, %v635_v55 }
 0x13f   : > { %v654_v60 = vpack.c.bf16 %v638_v58, %v636_v57 }
 0x140   : > { %830 = vmatmul.bf16.gmra.mxu2 %v653_v59 }
 0x141   : > { %879 = vmatmul.bf16.gmra.mxu3 %v654_v60 }
 0x153   : > { %v796_v61 = vpop.f32.mrf.mxu2 }
 0x154   : > { %v845_v62 = vpop.f32.mrf.mxu3  ;;  %v797_v11 = vadd.f32 %v1508_v63, %v796_v61 }
 0x156   : > { %v846_v2 = vadd.f32 %v845_v62, %v797_v11 }
 0x15b   : > { %v798_v12 = vpop.f32.mrf.mxu2 }
 0x15c   : > { %v799_v0 = vadd.f32 %v1508_v63, %v798_v12  ;;  %v847_v1 = vpop.f32.mrf.mxu3 }
 0x15e   : > { %v848_v3 = vadd.f32 %v847_v1, %v799_v0 }
 0x160   : > { %v1240_v4 = vpack.c.bf16 %v848_v3, %v846_v2 }
 0x162   : > { %1241 = vst [vmem:[%s1386_s19] sm:$0xff] %v1240_v4  }
 0x163   : > { %v801_v5 = vpop.f32.mrf.mxu2 }
 0x164   : > { %v850_v6 = vpop.f32.mrf.mxu3  ;;  %v802_v7 = vadd.f32 %v1508_v63, %v801_v5 }
 0x166   : > { %v851_v13 = vadd.f32 %v850_v6, %v802_v7 }
 0x16b   : > { %v803_v8 = vpop.f32.mrf.mxu2 }
 0x16c   : > { %v804_v9 = vadd.f32 %v1508_v63, %v803_v8  ;;  %v852_v10 = vpop.f32.mrf.mxu3 }
 0x16e   : > { %v853_v14 = vadd.f32 %v852_v10, %v804_v9 }
 0x170   : > { %v1245_v15 = vpack.c.bf16 %v853_v14, %v851_v13 }
 0x172   : > { %1277 = vst [vmem:[%s1386_s19 + $0x8] sm:$0xff] %v1245_v15  }
 0x173   : > { %v806_v16 = vpop.f32.mrf.mxu2 }
 0x174   : > { %v855_v17 = vpop.f32.mrf.mxu3  ;;  %v807_v18 = vadd.f32 %v1508_v63, %v806_v16 }
 0x176   : > { %v856_v22 = vadd.f32 %v855_v17, %v807_v18 }
 0x17b   : > { %v808_v19 = vpop.f32.mrf.mxu2 }
 0x17c   : > { %v809_v20 = vadd.f32 %v1508_v63, %v808_v19  ;;  %v857_v21 = vpop.f32.mrf.mxu3 }
 0x17e   : > { %v858_v23 = vadd.f32 %v857_v21, %v809_v20 }
 0x180   : > { %v1250_v24 = vpack.c.bf16 %v858_v23, %v856_v22 }
 0x182   : > { %1278 = vst [vmem:[%s1386_s19 + $0x10] sm:$0xff] %v1250_v24  }
 0x183   : > { %v811_v25 = vpop.f32.mrf.mxu2 }
 0x184   : > { %v860_v26 = vpop.f32.mrf.mxu3  ;;  %v812_v27 = vadd.f32 %v1508_v63, %v811_v25 }
 0x186   : > { %v861_v31 = vadd.f32 %v860_v26, %v812_v27 }
 0x18b   : > { %v813_v28 = vpop.f32.mrf.mxu2 }
 0x18c   : > { %v814_v29 = vadd.f32 %v1508_v63, %v813_v28  ;;  %v862_v30 = vpop.f32.mrf.mxu3 }
 0x18e   : > { %v863_v32 = vadd.f32 %v862_v30, %v814_v29 }
 0x190   : > { %v1255_v33 = vpack.c.bf16 %v863_v32, %v861_v31 }
 0x192   : > { %1279 = vst [vmem:[%s1386_s19 + $0x18] sm:$0xff] %v1255_v33  }
 0x193   : > { %v816_v34 = vpop.f32.mrf.mxu2 }
 0x194   : > { %v865_v35 = vpop.f32.mrf.mxu3  ;;  %v817_v36 = vadd.f32 %v1508_v63, %v816_v34 }
 0x196   : > { %v866_v40 = vadd.f32 %v865_v35, %v817_v36 }
 0x19b   : > { %v818_v37 = vpop.f32.mrf.mxu2 }
 0x19c   : > { %v819_v38 = vadd.f32 %v1508_v63, %v818_v37  ;;  %v867_v39 = vpop.f32.mrf.mxu3 }
 0x19e   : > { %v868_v41 = vadd.f32 %v867_v39, %v819_v38 }
 0x1a0   : > { %v1260_v42 = vpack.c.bf16 %v868_v41, %v866_v40 }
 0x1a2   : > { %1280 = vst [vmem:[%s1386_s19 + $0x20] sm:$0xff] %v1260_v42  }
 0x1a3   : > { %v821_v43 = vpop.f32.mrf.mxu2 }
 0x1a4   : > { %v870_v44 = vpop.f32.mrf.mxu3  ;;  %v822_v45 = vadd.f32 %v1508_v63, %v821_v43 }
 0x1a6   : > { %v871_v49 = vadd.f32 %v870_v44, %v822_v45 }
 0x1ab   : > { %v823_v46 = vpop.f32.mrf.mxu2 }
 0x1ac   : > { %v824_v47 = vadd.f32 %v1508_v63, %v823_v46  ;;  %v872_v48 = vpop.f32.mrf.mxu3 }
 0x1ae   : > { %v873_v50 = vadd.f32 %v872_v48, %v824_v47 }
 0x1b0   : > { %v1265_v51 = vpack.c.bf16 %v873_v50, %v871_v49 }
 0x1b2   : > { %1281 = vst [vmem:[%s1386_s19 + $0x28] sm:$0xff] %v1265_v51  }
 0x1b3   : > { %v826_v52 = vpop.f32.mrf.mxu2 }
 0x1b4   : > { %v875_v53 = vpop.f32.mrf.mxu3  ;;  %v827_v54 = vadd.f32 %v1508_v63, %v826_v52 }
 0x1b6   : > { %v876_v58 = vadd.f32 %v875_v53, %v827_v54 }
 0x1bb   : > { %v828_v55 = vpop.f32.mrf.mxu2 }
 0x1bc   : > { %v829_v56 = vadd.f32 %v1508_v63, %v828_v55  ;;  %v877_v57 = vpop.f32.mrf.mxu3 }
 0x1be   : > { %v878_v59 = vadd.f32 %v877_v57, %v829_v56 }
 0x1c0   : > { %v1270_v60 = vpack.c.bf16 %v878_v59, %v876_v58 }
 0x1c2   : > { %1282 = vst [vmem:[%s1386_s19 + $0x30] sm:$0xff] %v1270_v60  }
 0x1c3   : > { %v831_v61 = vpop.f32.mrf.mxu2 }
 0x1c4   : > { %v880_v62 = vpop.f32.mrf.mxu3  ;;  %v832_v11 = vadd.f32 %v1508_v63, %v831_v61 }
 0x1c6   : > { %v881_v2 = vadd.f32 %v880_v62, %v832_v11 }
 0x1cb   : > { %v833_v12 = vpop.f32.mrf.mxu2 }
 0x1cc   : > { %v834_v0 = vadd.f32 %v1508_v63, %v833_v12  ;;  %v882_v1 = vpop.f32.mrf.mxu3 }
 0x1ce   : > { %v883_v3 = vadd.f32 %v882_v1, %v834_v0 }
 0x1d0   : > { %v1275_v4 = vpack.c.bf16 %v883_v3, %v881_v2 }
 0x1d2   : > { %1283 = vst [vmem:[%s1386_s19 + $0x38] sm:$0xff] %v1275_v4  }
 0x1d3 PF: > { %s26_s30 = sadd.s32 1, %s1314_s30  }
 0x1d4   : > { %p23_p9 = scmp.ge.s32.totalorder %s26_s30, 7  }
 0x1d6   :  { %25 = sbr.rel (!%p23_p9) target bundleno = 7 (0x7), region = 86 }

</bundles_post_ra>
